<compile_context>
chip_gen: v6e
topology: v6e:2x2x1
jax: 0.10.0
libtpu: 0.0.40
codegen_flags: <defaults>
</compile_context>

<pallas_src>
import jax
import jax.numpy as jnp
from jax.experimental import pallas as pl
from jax.experimental.pallas import tpu as pltpu


def _copy_kernel(x_ref, o_ref):
    # Pure pass-through on the current VMEM tile.
    o_ref[...] = x_ref[...]


def _choose_layout(n_elems: int, itemsize: int):
    """Pick (lane_width, padded_n, rows, tile_rows, grid) for a flat copy."""
    # Widest lane dim (multiple of 128) that divides the element count.
    width = 128
    for w in (4096, 2048, 1024, 512, 256, 128):
        if n_elems % w == 0:
            width = w
            break
    padded_n = -(-n_elems // width) * width          # ceil to multiple of width
    rows = padded_n // width
    # ~2 MiB tiles: with double-buffered input + output (4 live buffers) this
    # stays far under v7x's 64 MiB VMEM and v5e's 16 MiB scoped default while
    # being large enough to amortize the ~0.35 us per-grid-step overhead.
    target_rows = max(8, (2 * 1024 * 1024) // (width * itemsize))
    if rows <= target_rows:
        tile_rows = rows                             # full-extent block is legal
    else:
        tile_rows = (target_rows // 8) * 8           # keep (8, 128) divisibility
    grid = pl.cdiv(rows, tile_rows)
    return width, padded_n, rows, tile_rows, grid


@jax.jit
def extract_b_channel(img: jax.Array) -> jax.Array:
    """ExtractBChannel.forward(img) == img (identity)."""
    orig_shape = img.shape
    dtype = img.dtype
    n = img.size
    itemsize = jnp.dtype(dtype).itemsize

    width, padded_n, rows, tile_rows, grid = _choose_layout(n, itemsize)

    flat = img.reshape(-1)
    if padded_n != n:
        flat = jnp.pad(flat, (0, padded_n - n))
    x2d = flat.reshape(rows, width)

    out2d = pl.pallas_call(
        _copy_kernel,
        out_shape=jax.ShapeDtypeStruct((rows, width), dtype),
        grid=(grid,),
        in_specs=[pl.BlockSpec((tile_rows, width), lambda i: (i, 0))],
        out_specs=pl.BlockSpec((tile_rows, width), lambda i: (i, 0)),
        compiler_params=pltpu.CompilerParams(
            dimension_semantics=("parallel",)),
    )(x2d)

    out_flat = out2d.reshape(-1)
    if padded_n != n:
        out_flat = out_flat[:n]
    return out_flat.reshape(orig_shape)


if __name__ == "__main__":
    key = jax.random.PRNGKey(0)
    # Small NCHW image consistent with the module's forward (any tensor works).
    x = jax.random.normal(key, (2, 4, 16, 16), dtype=jnp.float32)

    y = extract_b_channel(x)
    y = jax.block_until_ready(y)

    assert y.shape == x.shape and y.dtype == x.dtype
    assert bool(jnp.all(y == x))
    print("KERNEL_OK")
</pallas_src>

<mosaic_0001>
module attributes {stable_mosaic.version = 11 : i64} {
  func.func @_copy_kernel(%arg0: i32, %arg1: memref<1x2048xf32, #tpu.memory_space<vmem>>, %arg2: memref<1x2048xf32, #tpu.memory_space<vmem>>) attributes {dimension_semantics = [#tpu.dimension_semantics<parallel>], iteration_bounds = array<i64: 1>, scalar_prefetch = 0 : i64, scratch_operands = 0 : i64, tpu.core_type = #tpu.core_type<tc>, window_params = [{transform_indices = @transform_0, window_bounds = array<i64: 1, 2048>}, {transform_indices = @transform_1, window_bounds = array<i64: 1, 2048>}]} {
    %c0 = arith.constant 0 : index
    %c0_0 = arith.constant 0 : index
    %0 = vector.load %arg1[%c0, %c0_0] : memref<1x2048xf32, #tpu.memory_space<vmem>>, vector<1x2048xf32>
    %c0_1 = arith.constant 0 : index
    %c0_2 = arith.constant 0 : index
    %1 = vector.load %arg2[%c0_1, %c0_2] : memref<1x2048xf32, #tpu.memory_space<vmem>>, vector<1x2048xf32>
    tpu.vector_store %arg2[%c0_1, %c0_2], %0 {strides = array<i32>} : memref<1x2048xf32, #tpu.memory_space<vmem>>, vector<1x2048xf32>,
    return
  }
  func.func @transform_0(%arg0: i32) -> (i32, i32) {
    %c0_i32 = arith.constant 0 : i32
    %c0_i32_0 = arith.constant 0 : i32
    return %arg0, %c0_i32 : i32, i32
  }
  func.func @transform_1(%arg0: i32) -> (i32, i32) {
    %c0_i32 = arith.constant 0 : i32
    %c0_i32_0 = arith.constant 0 : i32
    return %arg0, %c0_i32 : i32, i32
  }
}

</mosaic_0001>

<bundles_post_ra>
// kernel: extract_b_channel.1
= control target key start
LH: loop header
LB: loop body
LE: loop exit
PB: predicated region body
PF: predicated region fallthrough
CT: control target
= control target key end

     0   :  { %s38_s0 = inlined_call_operand.vmem [shape: f32[1,2048], index: 0, kind: input, shape index: {}]   ;;  %s39_s1 = inlined_call_operand.vmem [shape: f32[1,2048], index: 1, kind: output, shape index: {}]  }
   0x1   :  { %v8_v0 = vld [vmem:[%s38_s0] sm:$0xff]  ;;  %v9_v1 = vld [vmem:[%s38_s0 + $0x8] sm:$0xff] }
   0x2   :  { %10 = vst [vmem:[%s39_s1] sm:$0xff] %v8_v0  ;;  %11 = vst [vmem:[%s39_s1 + $0x8] sm:$0xff] %v9_v1 }

</bundles_post_ra>
